<compile_context>
chip_gen: v6e
topology: v6e:2x2x1
jax: 0.10.0
libtpu: 0.0.40
codegen_flags: <defaults>
</compile_context>

<pallas_src>
import functools

import jax
import jax.numpy as jnp
from jax.experimental import pallas as pl
from jax.experimental.pallas import tpu as pltpu


# ----------------------------------------------------------------------------
# Pallas kernel: fused gather + aggregate over inputs (one input per grid step)
# ----------------------------------------------------------------------------
def _aggregate_kernel(probs_ref, idx_ref, out_ref, *, num_classes,
                      aggregate_strategy, class_loop):
    # probs_ref: (C, Bt) float32  -- one input's distributions, batch on lanes
    # idx_ref  : (S, Bt) int32    -- one input's sampled class indices
    # out_ref  : (S, Bt) float32  -- accumulator, resident across the N axis
    n = pl.program_id(1)
    idx = idx_ref[...]                                   # (S, Bt)
    S, Bt = idx.shape

    if class_loop:
        # Small C: C static selects on dense (S, Bt) vregs.  No 3-D temp, no
        # cross-lane reduce.  Out-of-range indices gather 0.0 (torch.gather
        # would error; indices from categorical sampling are always in range).
        gathered = jnp.zeros((S, Bt), dtype=jnp.float32)
        for c in range(num_classes):
            p_c = probs_ref[c:c + 1, :]                  # (1, Bt), lane-dense
            gathered = jnp.where(idx == c, p_c, gathered)
    else:
        # Large C: loop over the (small) sample axis; each row uses only a
        # (C, Bt) select temp + a cheap sublane-axis reduction.  One-hot is a
        # select (no int->f32 cast, no multiply).
        p = probs_ref[...]                               # (C, Bt)
        class_iota = jax.lax.broadcasted_iota(           # hoisted out of loop
            jnp.int32, (num_classes, Bt), 0)
        rows = []
        for s in range(S):
            sel = jnp.where(idx[s:s + 1, :] == class_iota, p, 0.0)  # (C, Bt)
            rows.append(jnp.sum(sel, axis=0, keepdims=True))        # (1, Bt)
        gathered = jnp.concatenate(rows, axis=0)         # (S, Bt)

    if aggregate_strategy == "minmax":
        first = jnp.minimum(gathered, 1.0)               # min(gather, ones)

        def combine(acc, g):
            return jnp.minimum(acc, g)
    else:  # 'addmult' and 'maxmult' both multiply in the reference code
        first = gathered                                 # ones * gather

        def combine(acc, g):
            return acc * g

    @pl.when(n == 0)
    def _init():
        out_ref[...] = first

    @pl.when(n != 0)
    def _accum():
        out_ref[...] = combine(out_ref[...], gathered)


def blackbox_result_probs(input_probs, sampled_indices,
                          aggregate_strategy="addmult", batch_tile=512):
    """input_probs: (N, B, C) f32, sampled_indices: (N, B, S) i32 -> (B, S) f32."""
    N, B, C = input_probs.shape
    S = sampled_indices.shape[-1]

    # Lane-dense layouts: batch on the last (lane) axis.
    probs_t = jnp.transpose(input_probs.astype(jnp.float32), (0, 2, 1))   # (N,C,B)
    idx_t = jnp.transpose(sampled_indices.astype(jnp.int32), (0, 2, 1))   # (N,S,B)

    if B > batch_tile:
        # Bound the batch tile so double-buffered inputs + resident output fit
        # well inside VMEM even for large class counts.
        per_lane_bytes = (2 * (C + S) + S) * 4           # 2x in bufs + out
        vmem_budget = 24 * 1024 * 1024
        max_bt = max(128, (vmem_budget // per_lane_bytes // 128) * 128)
        bt = max(128, min((batch_tile // 128) * 128, max_bt))
        pad = (-B) % bt
        if pad:
            probs_t = jnp.pad(probs_t, ((0, 0), (0, 0), (0, pad)))
            idx_t = jnp.pad(idx_t, ((0, 0), (0, 0), (0, pad)))
        Bp = B + pad
    else:
        bt = B            # full array dim -> (8,128) constraint satisfied
        Bp = B

    kernel = functools.partial(
        _aggregate_kernel,
        num_classes=C,
        aggregate_strategy=aggregate_strategy,
        class_loop=(C <= 64),
    )

    out_t = pl.pallas_call(
        kernel,
        out_shape=jax.ShapeDtypeStruct((S, Bp), jnp.float32),
        grid_spec=pltpu.PrefetchScalarGridSpec(
            num_scalar_prefetch=0,
            grid=(Bp // bt, N),                           # N last: reduction axis
            in_specs=[
                pl.BlockSpec((None, C, bt), lambda b, n: (n, 0, b)),
                pl.BlockSpec((None, S, bt), lambda b, n: (n, 0, b)),
            ],
            out_specs=pl.BlockSpec((S, bt), lambda b, n: (0, b)),
        ),
        compiler_params=pltpu.CompilerParams(
            dimension_semantics=("parallel", "arbitrary"),
            vmem_limit_bytes=64 * 1024 * 1024,
        ),
        cost_estimate=pl.CostEstimate(
            flops=2 * N * Bp * S * C,
            transcendentals=0,
            bytes_accessed=N * Bp * (C + S) * 4 + Bp * S * 4,
        ),
    )(probs_t, idx_t)

    # Wrapper-side layout plumbing back to the reference (B, S) shape.
    return out_t[:, :B].T


# ----------------------------------------------------------------------------
# BlackBoxFunction forward (JAX glue around the kernel)
# ----------------------------------------------------------------------------
def blackbox_forward(key, inputs, sample_count=16, aggregate_strategy="addmult"):
    """inputs: tuple of (batch, num_classes) probability tensors (same num_classes).

    Returns (sampled_indices, result_probs).  The host-side black-box function
    invocation and OutputMapping.vectorize are not tensor ops.
    """
    num_inputs = len(inputs)
    batch = inputs[0].shape[0]
    for x in inputs[1:]:
        assert x.shape[0] == batch, "all inputs must have the same batch size"

    # InputMapping.sample with sample_strategy='categorical' (plain-JAX glue).
    keys = jax.random.split(key, num_inputs)
    sampled = []
    for k, x in zip(keys, inputs):
        logits = jnp.log(jnp.clip(x, 1e-9, None))
        idx = jax.random.categorical(k, logits, axis=-1,
                                     shape=(sample_count, batch)).T
        sampled.append(idx.astype(jnp.int32))            # (batch, sample_count)
    sampled_indices = jnp.stack(sampled, axis=0)          # (N, B, S)
    input_probs = jnp.stack(inputs, axis=0)               # (N, B, C)

    # TODO(synk): invoke_function_on_batched_inputs is a host-side Python
    # callback on sampled symbolic elements; no Pallas equivalent.
    # TODO(synk): output_mapping.vectorize is abstract; returning the raw
    # (sampled_indices, result_probs) pair instead.
    result_probs = blackbox_result_probs(
        input_probs, sampled_indices, aggregate_strategy
    )
    return sampled_indices, result_probs


if __name__ == "__main__":
    key = jax.random.PRNGKey(0)
    batch, num_classes, sample_count, num_inputs = 2, 10, 16, 2

    # Deterministic example inputs: per-batch categorical distributions.
    k_in, k_sample = jax.random.split(key)
    raw = jax.random.uniform(k_in, (num_inputs, batch, num_classes),
                             dtype=jnp.float32)
    probs = raw / jnp.sum(raw, axis=-1, keepdims=True)
    inputs = tuple(probs[i] for i in range(num_inputs))

    # --- addmult (multiply aggregation) ---
    sampled_indices, result_probs = blackbox_forward(
        k_sample, inputs, sample_count=sample_count,
        aggregate_strategy="addmult")
    result_probs = jax.block_until_ready(result_probs)

    ref = jnp.ones((batch, sample_count), jnp.float32)
    for i in range(num_inputs):
        ref = ref * jnp.take_along_axis(inputs[i], sampled_indices[i], axis=1)
    assert result_probs.shape == (batch, sample_count)
    assert jnp.allclose(result_probs, ref, atol=1e-6), "addmult mismatch"

    # --- minmax aggregation ---
    result_probs_mm = jax.block_until_ready(
        blackbox_result_probs(jnp.stack(inputs, 0), sampled_indices, "minmax"))
    ref_mm = jnp.ones((batch, sample_count), jnp.float32)
    for i in range(num_inputs):
        ref_mm = jnp.minimum(
            jnp.take_along_axis(inputs[i], sampled_indices[i], axis=1), ref_mm)
    assert jnp.allclose(result_probs_mm, ref_mm, atol=1e-6), "minmax mismatch"

    # --- large-class-count path (exercises the row-loop gather) ---
    big_C = 200
    k_big, k_big_s = jax.random.split(k_in)
    raw_big = jax.random.uniform(k_big, (num_inputs, batch, big_C), jnp.float32)
    probs_big = raw_big / jnp.sum(raw_big, axis=-1, keepdims=True)
    idx_big = jax.random.randint(
        k_big_s, (num_inputs, batch, sample_count), 0, big_C, dtype=jnp.int32)
    got_big = jax.block_until_ready(
        blackbox_result_probs(probs_big, idx_big, "addmult"))
    ref_big = jnp.ones((batch, sample_count), jnp.float32)
    for i in range(num_inputs):
        ref_big = ref_big * jnp.take_along_axis(probs_big[i], idx_big[i], axis=1)
    assert jnp.allclose(got_big, ref_big, atol=1e-6), "large-C mismatch"

    print("KERNEL_OK")
</pallas_src>

<mosaic_0001>
module attributes {stable_mosaic.version = 11 : i64} {
  func.func @_aggregate_kernel(%arg0: i32, %arg1: i32, %arg2: memref<1x10x2xf32, #tpu.memory_space<vmem>>, %arg3: memref<1x16x2xi32, #tpu.memory_space<vmem>>, %arg4: memref<16x2xf32, #tpu.memory_space<vmem>>) attributes {dimension_semantics = [#tpu.dimension_semantics<parallel>, #tpu.dimension_semantics<arbitrary>], iteration_bounds = array<i64: 1, 2>, scalar_prefetch = 0 : i64, scratch_operands = 0 : i64, tpu.core_type = #tpu.core_type<tc>, window_params = [{transform_indices = @transform_0, window_bounds = array<i64: 1, 10, 2>}, {transform_indices = @transform_1, window_bounds = array<i64: 1, 16, 2>}, {transform_indices = @transform_2, window_bounds = array<i64: 16, 2>}]} {
    %c0 = arith.constant 0 : index
    %c0_0 = arith.constant 0 : index
    %c0_1 = arith.constant 0 : index
    %0 = vector.load %arg3[%c0, %c0_0, %c0_1] : memref<1x16x2xi32, #tpu.memory_space<vmem>>, vector<1x16x2xi32>
    %1 = vector.shape_cast %0 : vector<1x16x2xi32> to vector<16x2xi32>
    %cst = arith.constant 0.000000e+00 : f32
    %2 = vector.broadcast %cst : f32 to vector<16x2xf32>
    %c0_2 = arith.constant 0 : index
    %c0_3 = arith.constant 0 : index
    %c0_4 = arith.constant 0 : index
    %3 = vector.load %arg2[%c0_2, %c0_3, %c0_4] : memref<1x10x2xf32, #tpu.memory_space<vmem>>, vector<1x1x2xf32>
    %4 = vector.shape_cast %3 : vector<1x1x2xf32> to vector<1x2xf32>
    %c0_i32 = arith.constant 0 : i32
    %5 = vector.broadcast %c0_i32 : i32 to vector<16x2xi32>
    %6 = arith.cmpi eq, %1, %5 : vector<16x2xi32>
    %7 = vector.shape_cast %4 : vector<1x2xf32> to vector<1x2xf32>
    %8 = vector.broadcast %7 : vector<1x2xf32> to vector<16x2xf32>
    %9 = arith.select %6, %8, %2 : vector<16x2xi1>, vector<16x2xf32>
    %c0_5 = arith.constant 0 : index
    %c1 = arith.constant 1 : index
    %c0_6 = arith.constant 0 : index
    %10 = vector.load %arg2[%c0_5, %c1, %c0_6] : memref<1x10x2xf32, #tpu.memory_space<vmem>>, vector<1x1x2xf32>
    %11 = vector.shape_cast %10 : vector<1x1x2xf32> to vector<1x2xf32>
    %c1_i32 = arith.constant 1 : i32
    %12 = vector.broadcast %c1_i32 : i32 to vector<16x2xi32>
    %13 = arith.cmpi eq, %1, %12 : vector<16x2xi32>
    %14 = vector.shape_cast %11 : vector<1x2xf32> to vector<1x2xf32>
    %15 = vector.broadcast %14 : vector<1x2xf32> to vector<16x2xf32>
    %16 = arith.select %13, %15, %9 : vector<16x2xi1>, vector<16x2xf32>
    %c0_7 = arith.constant 0 : index
    %c2 = arith.constant 2 : index
    %c0_8 = arith.constant 0 : index
    %17 = vector.load %arg2[%c0_7, %c2, %c0_8] : memref<1x10x2xf32, #tpu.memory_space<vmem>>, vector<1x1x2xf32>
    %18 = vector.shape_cast %17 : vector<1x1x2xf32> to vector<1x2xf32>
    %c2_i32 = arith.constant 2 : i32
    %19 = vector.broadcast %c2_i32 : i32 to vector<16x2xi32>
    %20 = arith.cmpi eq, %1, %19 : vector<16x2xi32>
    %21 = vector.shape_cast %18 : vector<1x2xf32> to vector<1x2xf32>
    %22 = vector.broadcast %21 : vector<1x2xf32> to vector<16x2xf32>
    %23 = arith.select %20, %22, %16 : vector<16x2xi1>, vector<16x2xf32>
    %c0_9 = arith.constant 0 : index
    %c3 = arith.constant 3 : index
    %c0_10 = arith.constant 0 : index
    %24 = vector.load %arg2[%c0_9, %c3, %c0_10] : memref<1x10x2xf32, #tpu.memory_space<vmem>>, vector<1x1x2xf32>
    %25 = vector.shape_cast %24 : vector<1x1x2xf32> to vector<1x2xf32>
    %c3_i32 = arith.constant 3 : i32
    %26 = vector.broadcast %c3_i32 : i32 to vector<16x2xi32>
    %27 = arith.cmpi eq, %1, %26 : vector<16x2xi32>
    %28 = vector.shape_cast %25 : vector<1x2xf32> to vector<1x2xf32>
    %29 = vector.broadcast %28 : vector<1x2xf32> to vector<16x2xf32>
    %30 = arith.select %27, %29, %23 : vector<16x2xi1>, vector<16x2xf32>
    %c0_11 = arith.constant 0 : index
    %c4 = arith.constant 4 : index
    %c0_12 = arith.constant 0 : index
    %31 = vector.load %arg2[%c0_11, %c4, %c0_12] : memref<1x10x2xf32, #tpu.memory_space<vmem>>, vector<1x1x2xf32>
    %32 = vector.shape_cast %31 : vector<1x1x2xf32> to vector<1x2xf32>
    %c4_i32 = arith.constant 4 : i32
    %33 = vector.broadcast %c4_i32 : i32 to vector<16x2xi32>
    %34 = arith.cmpi eq, %1, %33 : vector<16x2xi32>
    %35 = vector.shape_cast %32 : vector<1x2xf32> to vector<1x2xf32>
    %36 = vector.broadcast %35 : vector<1x2xf32> to vector<16x2xf32>
    %37 = arith.select %34, %36, %30 : vector<16x2xi1>, vector<16x2xf32>
    %c0_13 = arith.constant 0 : index
    %c5 = arith.constant 5 : index
    %c0_14 = arith.constant 0 : index
    %38 = vector.load %arg2[%c0_13, %c5, %c0_14] : memref<1x10x2xf32, #tpu.memory_space<vmem>>, vector<1x1x2xf32>
    %39 = vector.shape_cast %38 : vector<1x1x2xf32> to vector<1x2xf32>
    %c5_i32 = arith.constant 5 : i32
    %40 = vector.broadcast %c5_i32 : i32 to vector<16x2xi32>
    %41 = arith.cmpi eq, %1, %40 : vector<16x2xi32>
    %42 = vector.shape_cast %39 : vector<1x2xf32> to vector<1x2xf32>
    %43 = vector.broadcast %42 : vector<1x2xf32> to vector<16x2xf32>
    %44 = arith.select %41, %43, %37 : vector<16x2xi1>, vector<16x2xf32>
    %c0_15 = arith.constant 0 : index
    %c6 = arith.constant 6 : index
    %c0_16 = arith.constant 0 : index
    %45 = vector.load %arg2[%c0_15, %c6, %c0_16] : memref<1x10x2xf32, #tpu.memory_space<vmem>>, vector<1x1x2xf32>
    %46 = vector.shape_cast %45 : vector<1x1x2xf32> to vector<1x2xf32>
    %c6_i32 = arith.constant 6 : i32
    %47 = vector.broadcast %c6_i32 : i32 to vector<16x2xi32>
    %48 = arith.cmpi eq, %1, %47 : vector<16x2xi32>
    %49 = vector.shape_cast %46 : vector<1x2xf32> to vector<1x2xf32>
    %50 = vector.broadcast %49 : vector<1x2xf32> to vector<16x2xf32>
    %51 = arith.select %48, %50, %44 : vector<16x2xi1>, vector<16x2xf32>
    %c0_17 = arith.constant 0 : index
    %c7 = arith.constant 7 : index
    %c0_18 = arith.constant 0 : index
    %52 = vector.load %arg2[%c0_17, %c7, %c0_18] : memref<1x10x2xf32, #tpu.memory_space<vmem>>, vector<1x1x2xf32>
    %53 = vector.shape_cast %52 : vector<1x1x2xf32> to vector<1x2xf32>
    %c7_i32 = arith.constant 7 : i32
    %54 = vector.broadcast %c7_i32 : i32 to vector<16x2xi32>
    %55 = arith.cmpi eq, %1, %54 : vector<16x2xi32>
    %56 = vector.shape_cast %53 : vector<1x2xf32> to vector<1x2xf32>
    %57 = vector.broadcast %56 : vector<1x2xf32> to vector<16x2xf32>
    %58 = arith.select %55, %57, %51 : vector<16x2xi1>, vector<16x2xf32>
    %c0_19 = arith.constant 0 : index
    %c8 = arith.constant 8 : index
    %c0_20 = arith.constant 0 : index
    %59 = vector.load %arg2[%c0_19, %c8, %c0_20] : memref<1x10x2xf32, #tpu.memory_space<vmem>>, vector<1x1x2xf32>
    %60 = vector.shape_cast %59 : vector<1x1x2xf32> to vector<1x2xf32>
    %c8_i32 = arith.constant 8 : i32
    %61 = vector.broadcast %c8_i32 : i32 to vector<16x2xi32>
    %62 = arith.cmpi eq, %1, %61 : vector<16x2xi32>
    %63 = vector.shape_cast %60 : vector<1x2xf32> to vector<1x2xf32>
    %64 = vector.broadcast %63 : vector<1x2xf32> to vector<16x2xf32>
    %65 = arith.select %62, %64, %58 : vector<16x2xi1>, vector<16x2xf32>
    %c0_21 = arith.constant 0 : index
    %c9 = arith.constant 9 : index
    %c0_22 = arith.constant 0 : index
    %66 = vector.load %arg2[%c0_21, %c9, %c0_22] : memref<1x10x2xf32, #tpu.memory_space<vmem>>, vector<1x1x2xf32>
    %67 = vector.shape_cast %66 : vector<1x1x2xf32> to vector<1x2xf32>
    %c9_i32 = arith.constant 9 : i32
    %68 = vector.broadcast %c9_i32 : i32 to vector<16x2xi32>
    %69 = arith.cmpi eq, %1, %68 : vector<16x2xi32>
    %70 = vector.shape_cast %67 : vector<1x2xf32> to vector<1x2xf32>
    %71 = vector.broadcast %70 : vector<1x2xf32> to vector<16x2xf32>
    %72 = arith.select %69, %71, %65 : vector<16x2xi1>, vector<16x2xf32>
    %c0_i32_23 = arith.constant 0 : i32
    %73 = arith.cmpi eq, %arg1, %c0_i32_23 : i32
    %74 = arith.extui %73 : i1 to i32
    %c0_i32_24 = arith.constant 0 : i32
    %75 = arith.cmpi ne, %74, %c0_i32_24 : i32
    scf.if %75 {
      %c0_27 = arith.constant 0 : index
      %c0_28 = arith.constant 0 : index
      %79 = vector.load %arg4[%c0_27, %c0_28] : memref<16x2xf32, #tpu.memory_space<vmem>>, vector<16x2xf32>
      tpu.vector_store %arg4[%c0_27, %c0_28], %72 {strides = array<i32>} : memref<16x2xf32, #tpu.memory_space<vmem>>, vector<16x2xf32>,
    } else {
    }
    %c0_i32_25 = arith.constant 0 : i32
    %76 = arith.cmpi ne, %arg1, %c0_i32_25 : i32
    %77 = arith.extui %76 : i1 to i32
    %c0_i32_26 = arith.constant 0 : i32
    %78 = arith.cmpi ne, %77, %c0_i32_26 : i32
    scf.if %78 {
      %c0_27 = arith.constant 0 : index
      %c0_28 = arith.constant 0 : index
      %79 = vector.load %arg4[%c0_27, %c0_28] : memref<16x2xf32, #tpu.memory_space<vmem>>, vector<16x2xf32>
      %80 = arith.mulf %79, %72 : vector<16x2xf32>
      %c0_29 = arith.constant 0 : index
      %c0_30 = arith.constant 0 : index
      %81 = vector.load %arg4[%c0_29, %c0_30] : memref<16x2xf32, #tpu.memory_space<vmem>>, vector<16x2xf32>
      tpu.vector_store %arg4[%c0_29, %c0_30], %80 {strides = array<i32>} : memref<16x2xf32, #tpu.memory_space<vmem>>, vector<16x2xf32>,
    } else {
    }
    return
  }
  func.func @transform_0(%arg0: i32, %arg1: i32) -> (i32, i32, i32) {
    %c0_i32 = arith.constant 0 : i32
    %c0_i32_0 = arith.constant 0 : i32
    return %arg1, %c0_i32, %arg0 : i32, i32, i32
  }
  func.func @transform_1(%arg0: i32, %arg1: i32) -> (i32, i32, i32) {
    %c0_i32 = arith.constant 0 : i32
    %c0_i32_0 = arith.constant 0 : i32
    return %arg1, %c0_i32, %arg0 : i32, i32, i32
  }
  func.func @transform_2(%arg0: i32, %arg1: i32) -> (i32, i32) {
    %c0_i32 = arith.constant 0 : i32
    %c0_i32_0 = arith.constant 0 : i32
    return %c0_i32, %arg0 : i32, i32
  }
}

</mosaic_0001>

<bundles_post_ra>
// kernel: tpu_custom_call.1
= control target key start
LH: loop header
LB: loop body
LE: loop exit
PB: predicated region body
PF: predicated region fallthrough
CT: control target
= control target key end

     0   :  { %s477_s9 = smov 0   ;;  %s479_s10 = smov 0   ;;  %s546_s0 = inlined_call_operand.vmem [shape: f32[2,10,2], index: 0, kind: input, shape index: {}]   ;;  %s547_s1 = inlined_call_operand.vmem [shape: s32[2,16,2], index: 1, kind: input, shape index: {}]   ;;  %s548_s2 = inlined_call_operand.vmem [shape: f32[16,2], index: 2, kind: output, shape index: {}]  }
   0x1   :  { %s481_s11 = smov 0  }
   0x2 LB: > { %s21_s12 = sadd.s32 1, %s456_s10  ;;  %p392_p0 = scmp.ge.s32.totalorder %s460_s11, 1  ;;  %s460_s11 = sphi %s481_s11, %s12_s11   ;;  %s456_s10 = sphi %s479_s10, %s550_s10   ;;  %s452_s9 = sphi %s477_s9, %s549_s9  }
   0x3   : > { %p22_p1 = scmp.ge.s32.totalorder %s21_s12, 2  ;;  %p144_p2 = scmp.lt.s32.totalorder %s460_s11, 3 }
   0x5   : > { %s552_s12 = smov (%p22_p1, %s21_s12), 0  ;;  %p145_p3 = pnand %p392_p0, %p144_p2 }
   0x6   : > { %p176_p4 = scmp.lt.s32.totalorder (!%p145_p3), %s452_s9, 1  ;;  %p407_p5 = scmp.ne.s32.totalorder (!%p145_p3), %s452_s9, 0 }
   0x7   : > { %148 = sbr.rel (%p145_p3) target bundleno = 41 (0x29), region = 28 }
   0xc   : > { %s177_s13 = scalar_select %p176_p4, %s452_s9, 1 }
   0xe   : > { %s412_s14 = sshll.u32 %s177_s13, 4 }
   0xf   : > { %s502_s17 = scalar_lea.vmem %s546_s0, %s412_s14  ;;  %s191_s20 = scalar_lea.vmem %s547_s1, %s412_s14 }
  0x10   : > { %v196_v0 = vld [vmem:[%s191_s20] sm:$0xff]  ;;  %v197_v1 = vld [vmem:[%s191_s20 + $0x8] sm:$0xff] }
  0x11   : > { %v397_v2 = vld [vmem:[%s502_s17] ss:$0 sm:$0xff]  ;;  %vm199_vm0 = vcmp.eq.s32.totalorder %v196_v0, 0  ;;  %vm200_vm1 = vcmp.eq.s32.totalorder %v197_v1, 0  ;;  %v398_v3 = vld [vmem:[%s502_s17 + $0x1] ss:$0 sm:$0xff] }
  0x12   : > { %vm208_vm2 = vcmp.eq.s32.totalorder %v196_v0, 1  ;;  %vm209_vm3 = vcmp.eq.s32.totalorder %v197_v1, 1  ;;  %v205_v4 = vsel %vm199_vm0, %v397_v2, 0.0  ;;  %v206_v5 = vsel %vm200_vm1, %v397_v2, 0.0  ;;  %v399_v6 = vld [vmem:[%s502_s17 + $0x2] ss:$0 sm:$0xff] }
  0x13   : > { %vm217_vm4 = vcmp.eq.s32.totalorder %v196_v0, 2  ;;  %vm218_vm5 = vcmp.eq.s32.totalorder %v197_v1, 2  ;;  %v214_v7 = vsel %vm208_vm2, %v398_v3, %v205_v4  ;;  %v215_v8 = vsel %vm209_vm3, %v398_v3, %v206_v5  ;;  %v400_v9 = vld [vmem:[%s502_s17 + $0x3] ss:$0 sm:$0xff]  ;;  %v401_v10 = vld [vmem:[%s502_s17 + $0x4] ss:$0 sm:$0xff] }
  0x14   : > { %vm226_vm6 = vcmp.eq.s32.totalorder %v196_v0, 3  ;;  %vm227_vm7 = vcmp.eq.s32.totalorder %v197_v1, 3  ;;  %v223_v11 = vsel %vm217_vm4, %v399_v6, %v214_v7  ;;  %v224_v12 = vsel %vm218_vm5, %v399_v6, %v215_v8  ;;  %v402_v13 = vld [vmem:[%s502_s17 + $0x5] ss:$0 sm:$0xff]  ;;  %v403_v16 = vld [vmem:[%s502_s17 + $0x6] ss:$0 sm:$0xff] }
  0x15   : > { %vm235_vm8 = vcmp.eq.s32.totalorder %v196_v0, 4  ;;  %vm236_vm9 = vcmp.eq.s32.totalorder %v197_v1, 4  ;;  %v232_v14 = vsel %vm226_vm6, %v400_v9, %v223_v11  ;;  %v233_v15 = vsel %vm227_vm7, %v400_v9, %v224_v12  ;;  %v404_v19 = vld [vmem:[%s502_s17 + $0x7] ss:$0 sm:$0xff]  ;;  %v405_v22 = vld [vmem:[%s502_s17 + $0x8] ss:$0 sm:$0xff] }
  0x16   : > { %vm244_vm10 = vcmp.eq.s32.totalorder %v196_v0, 5  ;;  %vm245_vm11 = vcmp.eq.s32.totalorder %v197_v1, 5  ;;  %v241_v17 = vsel %vm235_vm8, %v401_v10, %v232_v14  ;;  %v242_v18 = vsel %vm236_vm9, %v401_v10, %v233_v15  ;;  %v406_v25 = vld [vmem:[%s502_s17 + $0x9] ss:$0 sm:$0xff] }
  0x17   : > { %vm253_vm12 = vcmp.eq.s32.totalorder %v196_v0, 6  ;;  %vm254_vm13 = vcmp.eq.s32.totalorder %v197_v1, 6  ;;  %v250_v20 = vsel %vm244_vm10, %v402_v13, %v241_v17  ;;  %v251_v21 = vsel %vm245_vm11, %v402_v13, %v242_v18  ;;  %291 = sbr.rel (%p407_p5) target bundleno = 30 (0x1e), region = 32 }
  0x18   : > { %vm262_vm14 = vcmp.eq.s32.totalorder %v196_v0, 7  ;;  %vm263_vm15 = vcmp.eq.s32.totalorder %v197_v1, 7  ;;  %v259_v23 = vsel %vm253_vm12, %v403_v16, %v250_v20  ;;  %v260_v24 = vsel %vm254_vm13, %v403_v16, %v251_v21 }
  0x19   : > { %vm271_vm0 = vcmp.eq.s32.totalorder %v196_v0, 8  ;;  %vm272_vm1 = vcmp.eq.s32.totalorder %v197_v1, 8  ;;  %v268_v26 = vsel %vm262_vm14, %v404_v19, %v259_v23  ;;  %v269_v27 = vsel %vm263_vm15, %v404_v19, %v260_v24 }
  0x1a   : > { %vm280_vm2 = vcmp.eq.s32.totalorder %v196_v0, 9  ;;  %vm281_vm3 = vcmp.eq.s32.totalorder %v197_v1, 9  ;;  %v277_v28 = vsel %vm271_vm0, %v405_v22, %v268_v26  ;;  %v278_v29 = vsel %vm272_vm1, %v405_v22, %v269_v27 }
  0x1b   : > { %v286_v30 = vsel %vm280_vm2, %v406_v25, %v277_v28  ;;  %v287_v31 = vsel %vm281_vm3, %v406_v25, %v278_v29 }
  0x1c   : > { %vm292_vm4 = vcmask 15360  }
  0x1d   : > { %293 = vst.msk [vmem:[%s548_s2] sm:$0xff] %vm292_vm4, %v286_v30  ;;  %294 = vst.msk [vmem:[%s548_s2 + $0x8] sm:$0xff] %vm292_vm4, %v287_v31 }
  0x1e PF: > { %p408_p6 = scmp.eq.s32.totalorder %s452_s9, 0 }
  0x20   : > { %298 = sbr.rel (%p408_p6) target bundleno = 41 (0x29), region = 36 }
  0x25   : > { %v299_v32 = vld [vmem:[%s548_s2] sm:$0xff]  ;;  %vm303_vm5 = vcmask 15360   ;;  %v300_v33 = vld [vmem:[%s548_s2 + $0x8] sm:$0xff] }
  0x26   : > { %v301_v34 = vmul.f32 %v299_v32, %v286_v30  ;;  %v302_v35 = vmul.f32 %v300_v33, %v287_v31 }
  0x28   : > { %304 = vst.msk [vmem:[%s548_s2] sm:$0xff] %vm303_vm5, %v301_v34  ;;  %305 = vst.msk [vmem:[%s548_s2 + $0x8] sm:$0xff] %vm303_vm5, %v302_v35 }
  0x29 PF: > { %s12_s11 = sadd.s32 1, %s460_s11   ;;  %s549_s9 = smov %s456_s10 }
  0x2a   : > { %p9_p7 = scmp.ge.s32.totalorder %s12_s11, 4   ;;  %s550_s10 = smov %s552_s12 }
  0x2c   :  { %11 = sbr.rel (!%p9_p7) target bundleno = 2 (0x2), region = 69 }

</bundles_post_ra>
